<compile_context>
chip_gen: v7x
topology: tpu7x:2x2x1
jax: 0.10.0
libtpu: 0.0.40
codegen_flags: <defaults>
</compile_context>

<pallas_src>
import jax
import jax.numpy as jnp
import numpy as np
from jax.experimental import pallas as pl
from jax.experimental.pallas import tpu as pltpu


# ----------------------------------------------------------------------------
# Fused kernel: adj = threshold(|fc1.weight * mask|), then the MLP stack.
#
# Torch semantics per sample i (weights W_l stored (out_l, in_l), bias=False):
#   y_i   = x_i @ adj                      (M, D)
#   z_0   = y_i^T                          (D, M)       <- permute(0, 2, 1)
#   z_l   = leaky_relu(z_{l-1}) @ W_l^T    (D, out_l)
#   out_i = z_K[:, 0]                      (D,)         <- squeeze(dim=2)
#
# Transposed + batch-on-lanes form used here:
#   Z_0 = [leaky-input of sample 0 | sample 1 | ...]  shape (M, TILE_N*D)
#   Z_l = W_l @ leaky_relu(Z_{l-1})                   shape (out_l, TILE_N*D)
# ----------------------------------------------------------------------------
def _make_kernel(tile_n, m, d, layer_dims, squeeze):
    n_layers = len(layer_dims) - 1

    def kernel(th_ref, params_ref, x_ref, out_ref, zbuf_ref):
        params = params_ref[...]                                # (2+L, PR, PC), tiny

        # ---- fc1_to_adj (forward value only) ----
        # edges_to_check == [] and family_of_concepts is None in the default module,
        # and the "+ sigmoid(E).detach()... - sigmoid(E).detach() + sigmoid(E)" terms
        # are exactly zero in the forward value -> dropped.
        w = jnp.abs(params[0, :d, :d] * params[1, :d, :d])      # |fc1.weight * mask|
        keep = w > th_ref[0] * jnp.max(w)                       # == |w|/max(|w|) > th, no divide
        adj = jnp.where(keep, w, 0.0)                           # (D, D)

        # ---- y = x @ adj for the whole batch tile in ONE unbatched MXU matmul ----
        x2d = x_ref[...].reshape(tile_n * m, d)                 # (TILE_N*M, D)
        y = jnp.dot(x2d, adj, preferred_element_type=jnp.float32)

        # ---- relayout ONCE: (TILE_N*M, D) -> (M, TILE_N*D), samples side-by-side
        #      on the lane axis (static 2-D slice stores into VMEM scratch) ----
        for i in range(tile_n):
            zbuf_ref[:, i * d:(i + 1) * d] = y[i * m:(i + 1) * m, :]
        z = zbuf_ref[...]                                       # (M, TILE_N*D)

        # ---- MLP stack: leaky_relu then Linear (bias=False), one matmul per layer ----
        for l in range(n_layers):
            a = jnp.maximum(z, 0.01 * z)                        # leaky_relu, slope 0.01
            in_l, out_l = layer_dims[l], layer_dims[l + 1]
            if squeeze and l == n_layers - 1:
                # out_l == 1: weighted sublane reduction instead of an M=1 MXU matmul.
                # (last-layer weight was packed pre-transposed as a column.)
                w_col = params[2 + l, :in_l, :1]                # (in_l, 1)
                out_ref[...] = jnp.sum(a * w_col, axis=0, keepdims=True)   # (1, TILE_N*D)
            else:
                wl = params[2 + l, :out_l, :in_l]               # (out_l, in_l)
                z = jnp.dot(wl, a, preferred_element_type=jnp.float32)     # (out_l, TILE_N*D)

        if not squeeze:
            out_ref[...] = z                                    # (out_dim, TILE_N*D)

    return kernel


def _pack_params(fc1_weight, mask, fc2_weights, squeeze):
    """Pack all small constant operands into ONE padded (2+L, PR, PC) buffer -> 1 DMA."""
    mats = [fc1_weight, mask] + list(fc2_weights[:-1])
    last = fc2_weights[-1]
    # For the squeeze (out_dim == 1) path, store the last weight as a column so the
    # kernel can do a VPU multiply + sublane reduce without any in-kernel transpose.
    mats.append(last.T if squeeze else last)
    pr = max(int(a.shape[0]) for a in mats)
    pc = max(int(a.shape[1]) for a in mats)
    padded = [jnp.pad(jnp.asarray(a, jnp.float32),
                      ((0, pr - a.shape[0]), (0, pc - a.shape[1]))) for a in mats]
    return jnp.stack(padded)


def _pick_tile_n(n, m, d, itemsize=4, vmem_budget_bytes=8 << 20):
    """Batch tile: whole batch if it fits a conservative budget (double-buffered x tile
    kept well under v5e's 16 MiB scoped-VMEM default; trivially fine on v6e/v7x);
    otherwise the largest divisor of n whose lane width (tile_n*d) stays 128-aligned."""
    cap = max(1, vmem_budget_bytes // (2 * m * d * itemsize))
    if n <= cap:
        return n
    for t in range(min(cap, n), 0, -1):
        if n % t == 0 and (t * d) % 128 == 0:
            return t
    return n
    # TODO(synk): at realistic batch, also cast x / weights to bf16 on entry
    # (f32 accumulation) for v6e/v7x MXU throughput; irrelevant at these toy shapes.


def dagma_forward(x, fc1_weight, mask, th, fc2_weights):
    """Fused DagmaCE forward.

    x:           (N, M, D) float32, M == dims[0], D == n_symbols
    fc1_weight:  (D, D)
    mask:        (D, D)
    th:          (1,) threshold parameter
    fc2_weights: list of (out_l, in_l) weights (nn.Linear layout, bias=False)
    returns:     (N, D) if dims[-1] == 1 (torch squeeze), else (N, D, out_dim)
    """
    n, m, d = x.shape
    layer_dims = [int(fc2_weights[0].shape[1])] + [int(w.shape[0]) for w in fc2_weights]
    assert m == layer_dims[0], "dims[0] must match x.shape[1]"
    out_dim = layer_dims[-1]
    squeeze = (out_dim == 1)

    tile_n = _pick_tile_n(n, m, d)
    assert n % tile_n == 0
    grid = (n // tile_n,)

    packed = _pack_params(fc1_weight, mask, fc2_weights, squeeze)
    th_arr = jnp.asarray(th, jnp.float32).reshape(1)

    smem_full = pl.BlockSpec(memory_space=pltpu.MemorySpace.SMEM)
    vmem_full = pl.BlockSpec(memory_space=pltpu.MemorySpace.VMEM)
    x_spec = pl.BlockSpec((tile_n, m, d), lambda i: (i, 0, 0))

    if squeeze:
        out_shape = jax.ShapeDtypeStruct((1, n * d), jnp.float32)
        out_spec = pl.BlockSpec((1, tile_n * d), lambda i: (0, i))
    else:
        out_shape = jax.ShapeDtypeStruct((out_dim, n * d), jnp.float32)
        out_spec = pl.BlockSpec((out_dim, tile_n * d), lambda i: (0, i))

    out = pl.pallas_call(
        _make_kernel(tile_n, m, d, layer_dims, squeeze),
        out_shape=out_shape,
        grid=grid,
        in_specs=[smem_full, vmem_full, x_spec],
        out_specs=out_spec,
        scratch_shapes=[pltpu.VMEM((m, tile_n * d), jnp.float32)],
        compiler_params=pltpu.CompilerParams(dimension_semantics=("parallel",)),
    )(th_arr, packed, x.astype(jnp.float32))

    if squeeze:
        # Lane-dense (1, N*D) slab -> (N, D); row-major reshape, free in the wrapper.
        return out.reshape(n, d)
    # (out_dim, N*D) -> (N, D, out_dim): torch's squeeze(dim=2) is a no-op here.
    return jnp.transpose(out.reshape(out_dim, n, d), (1, 2, 0))


# ----------------------------------------------------------------------------
# Pure-JAX reference (mirrors the PyTorch forward, incl. the value-zero +s-s term)
# ----------------------------------------------------------------------------
def ref_fc1_to_adj(fc1_weight, mask, th, edge_matrix):
    w = jnp.abs(fc1_weight * mask)
    keep = (jnp.abs(w) / jnp.max(jnp.abs(w))) > th
    w = w * keep.astype(w.dtype)
    s = jax.nn.sigmoid(edge_matrix)
    return w - s + s          # detach terms cancel in the forward value


def ref_forward(x, fc1_weight, mask, th, edge_matrix, fc2_weights):
    hp = jax.lax.Precision.HIGHEST
    adj = ref_fc1_to_adj(fc1_weight, mask, th, edge_matrix)
    y = jnp.matmul(x, adj, precision=hp)          # (N, M, D)
    y = jnp.transpose(y, (0, 2, 1))               # (N, D, M)
    for w in fc2_weights:
        y = jnp.where(y > 0, y, 0.01 * y)
        y = jnp.matmul(y, w.T, precision=hp)
    if y.shape[-1] == 1:
        y = y[..., 0]
    return y


if __name__ == "__main__":
    # Module hyper-parameters (small, consistent with DagmaCE.__init__)
    n_concepts, n_classes = 10, 6
    d = n_concepts + n_classes                     # n_symbols = 16
    batch = 4

    key = jax.random.PRNGKey(0)
    k_x, k_fc1, k_a, k_b, k_c, k_e = jax.random.split(key, 6)

    bound1 = 1.0 / np.sqrt(d)
    fc1_weight = jax.random.uniform(k_fc1, (d, d), jnp.float32, -bound1, bound1)
    edge_matrix = jnp.zeros((d, d), jnp.float32)   # forward-dead; kept for the reference
    th = jnp.array([0.1], jnp.float32)

    # mask = 1 - I ; rows for class symbols zeroed
    mask = jnp.ones((d, d), jnp.float32) - jnp.eye(d, dtype=jnp.float32)
    mask = mask.at[n_concepts:].set(0.0)

    def make_fc2(keys, dims):
        ws = []
        for kk, (din, dout) in zip(keys, zip(dims[:-1], dims[1:])):
            b = 1.0 / np.sqrt(din)
            ws.append(jax.random.uniform(kk, (dout, din), jnp.float32, -b, b))
        return ws

    # --- config 1: dims[-1] == 1 -> torch squeeze(dim=2) applies, output (N, D) ---
    dims1 = [8, 32, 1]
    fc2_1 = make_fc2((k_a, k_b), dims1)
    x1 = jax.random.normal(k_x, (batch, dims1[0], d), jnp.float32)
    out1 = jax.block_until_ready(dagma_forward(x1, fc1_weight, mask, th, fc2_1))
    ref1 = ref_forward(x1, fc1_weight, mask, th, edge_matrix, fc2_1)
    np.testing.assert_allclose(np.asarray(out1), np.asarray(ref1), rtol=5e-4, atol=5e-4)
    assert out1.shape == (batch, d)

    # --- config 2: dims[-1] != 1 -> squeeze is a no-op, output (N, D, out_dim) ---
    dims2 = [8, 24, 3]
    fc2_2 = make_fc2((k_c, k_e), dims2)
    x2 = jax.random.normal(k_x, (batch, dims2[0], d), jnp.float32)
    out2 = jax.block_until_ready(dagma_forward(x2, fc1_weight, mask, th, fc2_2))
    ref2 = ref_forward(x2, fc1_weight, mask, th, edge_matrix, fc2_2)
    np.testing.assert_allclose(np.asarray(out2), np.asarray(ref2), rtol=5e-4, atol=5e-4)
    assert out2.shape == (batch, d, dims2[-1])

    print("KERNEL_OK")
</pallas_src>

<mosaic_0001>
module attributes {stable_mosaic.version = 11 : i64} {
  func.func @kernel(%arg0: i32, %arg1: memref<1xf32, #tpu.memory_space<smem>>, %arg2: memref<4x32x16xf32, #tpu.memory_space<vmem>>, %arg3: memref<4x8x16xf32, #tpu.memory_space<vmem>>, %arg4: memref<1x64xf32, #tpu.memory_space<vmem>>, %arg5: memref<8x64xf32, #tpu.memory_space<vmem>>) attributes {dimension_semantics = [#tpu.dimension_semantics<parallel>], iteration_bounds = array<i64: 1>, scalar_prefetch = 0 : i64, scratch_operands = 1 : i64, tpu.core_type = #tpu.core_type<tc>, window_params = [{transform_indices = @transform_0, window_bounds = array<i64: 1>}, {pipeline_mode = #tpu.pipeline_mode<synchronous>, transform_indices = @transform_1, window_bounds = array<i64: 4, 32, 16>}, {transform_indices = @transform_2, window_bounds = array<i64: 4, 8, 16>}, {transform_indices = @transform_3, window_bounds = array<i64: 1, 64>}]} {
    %c0 = arith.constant 0 : index
    %c0_0 = arith.constant 0 : index
    %c0_1 = arith.constant 0 : index
    %0 = vector.load %arg2[%c0, %c0_0, %c0_1] : memref<4x32x16xf32, #tpu.memory_space<vmem>>, vector<4x32x16xf32>
    %1 = vector.extract_strided_slice %0 {offsets = [0, 0, 0], sizes = [1, 16, 16], strides = [1, 1, 1]} : vector<4x32x16xf32> to vector<1x16x16xf32>
    %2 = vector.shape_cast %1 : vector<1x16x16xf32> to vector<16x16xf32>
    %3 = vector.extract_strided_slice %0 {offsets = [1, 0, 0], sizes = [1, 16, 16], strides = [1, 1, 1]} : vector<4x32x16xf32> to vector<1x16x16xf32>
    %4 = vector.shape_cast %3 : vector<1x16x16xf32> to vector<16x16xf32>
    %5 = arith.mulf %2, %4 : vector<16x16xf32>
    %6 = math.absf %5 : vector<16x16xf32>
    %c0_2 = arith.constant 0 : index
    %7 = memref.load %arg1[%c0_2] : memref<1xf32, #tpu.memory_space<smem>>
    %8 = vector.shape_cast %6 : vector<16x16xf32> to vector<1x16x16xf32>
    %cst = arith.constant dense<0xFF800000> : vector<1xf32>
    %9 = vector.multi_reduction <maximumf>, %8, %cst [1, 2] : vector<1x16x16xf32> to vector<1xf32>
    %10 = vector.shape_cast %9 : vector<1xf32> to vector<1x1x1xf32>
    %11 = vector.extract %10[0, 0, 0] : f32 from vector<1x1x1xf32>
    %12 = arith.mulf %7, %11 : f32
    %13 = vector.broadcast %12 : f32 to vector<16x16xf32>
    %14 = arith.cmpf ogt, %6, %13 : vector<16x16xf32>
    %cst_3 = arith.constant 0.000000e+00 : f32
    %15 = vector.broadcast %cst_3 : f32 to vector<16x16xf32>
    %16 = arith.select %14, %6, %15 : vector<16x16xi1>, vector<16x16xf32>
    %c0_4 = arith.constant 0 : index
    %c0_5 = arith.constant 0 : index
    %c0_6 = arith.constant 0 : index
    %17 = vector.load %arg3[%c0_4, %c0_5, %c0_6] : memref<4x8x16xf32, #tpu.memory_space<vmem>>, vector<4x8x16xf32>
    %18 = vector.shape_cast %17 : vector<4x8x16xf32> to vector<32x16xf32>
    %cst_7 = arith.constant dense<0.000000e+00> : vector<32x16xf32>
    %19 = tpu.matmul %18, %16, %cst_7 {dimension_numbers = #tpu.dot_dimension_numbers<[1], [0], [0], [1], [0, 0, 1, 1], [], []>} : vector<32x16xf32>, vector<16x16xf32>, vector<32x16xf32> -> vector<32x16xf32>
    %20 = vector.extract_strided_slice %19 {offsets = [0, 0], sizes = [8, 16], strides = [1, 1]} : vector<32x16xf32> to vector<8x16xf32>
    %c0_8 = arith.constant 0 : index
    %c0_9 = arith.constant 0 : index
    %21 = vector.load %arg5[%c0_8, %c0_9] : memref<8x64xf32, #tpu.memory_space<vmem>>, vector<8x16xf32>
    tpu.vector_store %arg5[%c0_8, %c0_9], %20 {strides = array<i32>} : memref<8x64xf32, #tpu.memory_space<vmem>>, vector<8x16xf32>,
    %22 = vector.extract_strided_slice %19 {offsets = [8, 0], sizes = [8, 16], strides = [1, 1]} : vector<32x16xf32> to vector<8x16xf32>
    %c0_10 = arith.constant 0 : index
    %c16 = arith.constant 16 : index
    %23 = vector.load %arg5[%c0_10, %c16] : memref<8x64xf32, #tpu.memory_space<vmem>>, vector<8x16xf32>
    tpu.vector_store %arg5[%c0_10, %c16], %22 {strides = array<i32>} : memref<8x64xf32, #tpu.memory_space<vmem>>, vector<8x16xf32>,
    %24 = vector.extract_strided_slice %19 {offsets = [16, 0], sizes = [8, 16], strides = [1, 1]} : vector<32x16xf32> to vector<8x16xf32>
    %c0_11 = arith.constant 0 : index
    %c32 = arith.constant 32 : index
    %25 = vector.load %arg5[%c0_11, %c32] : memref<8x64xf32, #tpu.memory_space<vmem>>, vector<8x16xf32>
    tpu.vector_store %arg5[%c0_11, %c32], %24 {strides = array<i32>} : memref<8x64xf32, #tpu.memory_space<vmem>>, vector<8x16xf32>,
    %26 = vector.extract_strided_slice %19 {offsets = [24, 0], sizes = [8, 16], strides = [1, 1]} : vector<32x16xf32> to vector<8x16xf32>
    %c0_12 = arith.constant 0 : index
    %c48 = arith.constant 48 : index
    %27 = vector.load %arg5[%c0_12, %c48] : memref<8x64xf32, #tpu.memory_space<vmem>>, vector<8x16xf32>
    tpu.vector_store %arg5[%c0_12, %c48], %26 {strides = array<i32>} : memref<8x64xf32, #tpu.memory_space<vmem>>, vector<8x16xf32>,
    %c0_13 = arith.constant 0 : index
    %c0_14 = arith.constant 0 : index
    %28 = vector.load %arg5[%c0_13, %c0_14] : memref<8x64xf32, #tpu.memory_space<vmem>>, vector<8x64xf32>
    %cst_15 = arith.constant 0.00999999977 : f32
    %29 = vector.broadcast %cst_15 : f32 to vector<8x64xf32>
    %30 = arith.mulf %29, %28 : vector<8x64xf32>
    %31 = arith.maximumf %28, %30 : vector<8x64xf32>
    %32 = vector.extract_strided_slice %0 {offsets = [2, 0, 0], sizes = [1, 32, 8], strides = [1, 1, 1]} : vector<4x32x16xf32> to vector<1x32x8xf32>
    %33 = vector.shape_cast %32 : vector<1x32x8xf32> to vector<32x8xf32>
    %cst_16 = arith.constant dense<0.000000e+00> : vector<32x64xf32>
    %34 = tpu.matmul %33, %31, %cst_16 {dimension_numbers = #tpu.dot_dimension_numbers<[1], [0], [0], [1], [0, 0, 1, 1], [], []>} : vector<32x8xf32>, vector<8x64xf32>, vector<32x64xf32> -> vector<32x64xf32>
    %cst_17 = arith.constant 0.00999999977 : f32
    %35 = vector.broadcast %cst_17 : f32 to vector<32x64xf32>
    %36 = arith.mulf %35, %34 : vector<32x64xf32>
    %37 = arith.maximumf %34, %36 : vector<32x64xf32>
    %38 = vector.extract_strided_slice %0 {offsets = [3, 0, 0], sizes = [1, 32, 1], strides = [1, 1, 1]} : vector<4x32x16xf32> to vector<1x32x1xf32>
    %39 = vector.shape_cast %38 : vector<1x32x1xf32> to vector<32x1xf32>
    %40 = vector.broadcast %39 : vector<32x1xf32> to vector<32x64xf32>
    %41 = arith.mulf %37, %40 : vector<32x64xf32>
    %cst_18 = arith.constant dense<0.000000e+00> : vector<64xf32>
    %42 = vector.multi_reduction <add>, %41, %cst_18 [0] : vector<32x64xf32> to vector<64xf32>
    %43 = vector.shape_cast %42 : vector<64xf32> to vector<1x64xf32>
    %c0_19 = arith.constant 0 : index
    %c0_20 = arith.constant 0 : index
    %44 = vector.load %arg4[%c0_19, %c0_20] : memref<1x64xf32, #tpu.memory_space<vmem>>, vector<1x64xf32>
    tpu.vector_store %arg4[%c0_19, %c0_20], %43 {strides = array<i32>} : memref<1x64xf32, #tpu.memory_space<vmem>>, vector<1x64xf32>,
    return
  }
  func.func @transform_0(%arg0: i32) -> i32 {
    %c0_i32 = arith.constant 0 : i32
    %c0_i32_0 = arith.constant 0 : i32
    return %c0_i32 : i32
  }
  func.func @transform_1(%arg0: i32) -> (i32, i32, i32) {
    %c0_i32 = arith.constant 0 : i32
    %c0_i32_0 = arith.constant 0 : i32
    %c0_i32_1 = arith.constant 0 : i32
    %c0_i32_2 = arith.constant 0 : i32
    return %c0_i32, %c0_i32_0, %c0_i32_1 : i32, i32, i32
  }
  func.func @transform_2(%arg0: i32) -> (i32, i32, i32) {
    %c0_i32 = arith.constant 0 : i32
    %c0_i32_0 = arith.constant 0 : i32
    %c0_i32_1 = arith.constant 0 : i32
    return %arg0, %c0_i32, %c0_i32_0 : i32, i32, i32
  }
  func.func @transform_3(%arg0: i32) -> (i32, i32) {
    %c0_i32 = arith.constant 0 : i32
    %c0_i32_0 = arith.constant 0 : i32
    return %c0_i32, %arg0 : i32, i32
  }
}

</mosaic_0001>

<bundles_post_ra>
// kernel: tpu_custom_call.1
= control target key start
LH: loop header
LB: loop body
LE: loop exit
PB: predicated region body
PF: predicated region fallthrough
CT: control target
= control target key end

     0   :  { %s516_s0 = inlined_call_operand.<no memory space> [shape: f32[1], index: 0, kind: input, shape index: {}]   ;;  %s517_s1 = inlined_call_operand.vmem [shape: f32[4,32,16], index: 1, kind: input, shape index: {}]   ;;  %s518_s2 = inlined_call_operand.vmem [shape: f32[4,8,16], index: 2, kind: input, shape index: {}]   ;;  %s519_s3 = inlined_call_operand.hbm [shape: f32[1,64], index: 3, kind: output, shape index: {}]  }
   0x1   :  { %v16_v0 = vld [vmem:[%s517_s1] sm:$0xff]  ;;  %v17_v1 = vld [vmem:[%s517_s1 + $0x8] sm:$0xff] }
   0x2   :  { %v18_v2 = vld [vmem:[%s517_s1 + $0x20] sm:$0xff]  ;;  %v19_v3 = vld [vmem:[%s517_s1 + $0x28] sm:$0xff] }
   0x3   :  { %v28_v4 = vmul.f32 %v18_v2, %v16_v0 }
   0x4   :  { %9 = vsyncpa [#allocation5], 0  ;;  %v29_v5 = vmul.f32 %v19_v3, %v17_v1  ;;  %vm33_vm0 = vcmask 130048   ;;  %v52_v11 = vld [vmem:[%s518_s2] sm:$0xff]  ;;  %v53_v21 = vld [vmem:[%s518_s2 + $0x8] sm:$0xff]  ;;  %s413_s4 = smov 16  }
   0x5   :  { %v30_v6 = vand.u32 2147483647, %v28_v4  ;;  %360 = vmatprep.mubr.msk.f32.mxu0 %vm33_vm0, %v52_v11  ;;  %v54_v22 = vld [vmem:[%s518_s2 + $0x10] sm:$0xff]  ;;  %v55_v23 = vld [vmem:[%s518_s2 + $0x18] sm:$0xff]  ;;  %s414_s5 = smov 32   ;;  %v20_v28 = vld [vmem:[%s517_s1 + $0x40] sm:$0xff] }
   0x6   :  { %v31_v7 = vand.u32 2147483647, %v29_v5  ;;  %vm175_vm4 = vcmask 64512   ;;  %s415_s8 = smov 48   ;;  %v24_v29 = vld [vmem:[%s517_s1 + $0x60] sm:$0xff]  ;;  %v416_v30 = vmov 0  }
   0x7   :  { %v34_v8 = vsel %vm33_vm0, %v30_v6, -inf  ;;  %368 = vmatprep.mubr.msk.f32.mxu1 %vm175_vm4, %v20_v28  ;;  %387 = vset.pattern.permute.xlu1 %v416_v30  ;;  %v25_v31 = vld [vmem:[%s517_s1 + $0x68] sm:$0xff]  ;;  %v26_v32 = vld [vmem:[%s517_s1 + $0x70] sm:$0xff]  ;;  %v27_v33 = vld [vmem:[%s517_s1 + $0x78] sm:$0xff]  ;;  %vm158_vm5 = vcmask 261248   ;;  %vm164_vm6 = vcmask 392448  }
   0x8   :  { %v35_v9 = vsel %vm33_vm0, %v31_v7, -inf  ;;  %v374_v19 = vpack.c.bf16 %v31_v7, %v30_v6  ;;  %388 = vset.pattern.permute.xlu0 %v416_v30  ;;  %vm170_vm7 = vcmask 523648   ;;  %v21_v40 = vld [vmem:[%s517_s1 + $0x48] sm:$0xff]  ;;  %v22_v41 = vld [vmem:[%s517_s1 + $0x50] sm:$0xff]  ;;  %v23_v42 = vld [vmem:[%s517_s1 + $0x58] sm:$0xff]  ;;  %vm305_vm8 = vcmask 523264  }
   0x9   :  { %v36_v10 = vmax.f32 %v34_v8, %v35_v9  ;;  %s417_s1 = smov [#allocation4]   ;;  %vm319_vm9 = vcmask 516096  }
   0xb   :  { %37 = vmax.xlane.f32.xlu0 %v36_v10 }
  0x98   :  { %v38_v12 = vpop.xlane.xlu0 %37 }
  0x99   :  { %v39_v13 = vrot.slane %v38_v12, 4 }
  0x9b   :  { %v40_v14 = vmax.f32 %v38_v12, %v39_v13 }
  0x9d   :  { %v41_v15 = vrot.slane %v40_v14, 2 }
  0x9f   :  { %v42_v16 = vmax.f32 %v40_v14, %v41_v15 }
  0xa1   :  { %v43_v17 = vrot.slane %v42_v16, 1 }
  0xa3   :  { %v44_v18 = vmax.f32 %v42_v16, %v43_v17 }
  0xa5   :  { %380 = vpush %v44_v18 }
  0xd6   :  { %s381_s22 = spop %380 }
  0xd7   :  { %s46_s25 = smul.f32 %s381_s22, %s516_s0  ;;  %s327_s22 = sshll.u32 %s417_s1, 4  ;;  %s328_s22 = int_to_ptr.vmem [resolvable:$true] %s327_s22 }
  0xd8   :  { %s389_s23 = scalar_lea.vmem %s328_s22, 16  ;;  %s393_s24 = scalar_lea.vmem %s328_s22, 32 }
  0xd9   :  { %v47_v20 = vstv %s46_s25  ;;  %p390_p0 = scmp.ne.s32.totalorder %s328_s22, %s389_s23  ;;  %p394_p1 = scmp.lt.s32.totalorder %s328_s22, %s328_s22 }
  0xda   :  { %vm48_vm1 = vcmp.gt.f32.partialorder %v30_v6, %v47_v20  ;;  %vm49_vm2 = vcmp.gt.f32.partialorder %v31_v7, %v47_v20  ;;  %p395_p2 = scmp.lt.s32.totalorder %s393_s24, %s389_s23 }
  0xdb   :  { %vm375_vm3 = vmpackc.low %vm49_vm2, %vm48_vm1 }
  0xdc   :  { %376 = vmatprep.subr.msk.bf16.mxu0 %vm375_vm3, %v374_v19  ;;  %p396_p3 = por %p395_p2, %p394_p1 }
  0xdd   :  { %379 = vmatpush3.bf16.msk.msra.mxu0 %vm375_vm3, %v374_v19 }
  0xde   :  { %p397_p4 = pnand %p396_p3, %p390_p0 }
  0xe0   :  { %361 = vmatmul.mubr.msk.f32.vlgmr.msra.gmra.mrb[0].mxu0 %vm33_vm0, %v53_v21 }
  0xe1   :  { %363 = vmatprep.mubr.msk.f32.mxu0 %vm33_vm0, %v54_v22 }
  0xe4   :  { %364 = vmatmul.mubr.msk.f32.gmra.mrb[2].mxu0 %vm33_vm0, %v55_v23 }
 0x1b3   :  { %v362_v24 = vpop.f32.mrb[0].mxu0 }
 0x1b4   :  { %155 = vrot.lane.b32.xlu0 %v362_v24, %s413_s4  ;;  %v134_v25 = vpop.f32.mrb[1].mxu0 }
 0x1b5   :  { %153 = vst.msk [vmem:[#allocation2] sm:$0xff] %vm33_vm0, %v134_v25 }
 0x1b7   :  { %v365_v26 = vpop.f32.mrb[2].mxu0 }
 0x1b8   :  { %v144_v27 = vpop.f32.mrb[3].mxu0 }
 0x1b9   :  { %161 = vrot.lane.b32.xlu1 %v144_v27, %s414_s5 }
 0x1bd   :  { %167 = vrot.lane.b32.xlu1 %v365_v26, %s415_s8 }
 0x1c1   :  { %283 = vperm.xlu1 %387, %v24_v29  }
 0x1c5   :  { %288 = vperm.xlu1 %387, %v25_v31  }
 0x1c9   :  { %293 = vperm.xlu1 %387, %v26_v32  }
 0x1cd   :  { %298 = vperm.xlu1 %387, %v27_v33  }
 0x226   :  { %v156_v34 = vpop.permute.xlu0 %155 }
 0x227   :  { %159 = vst.msk [vmem:[#allocation2] sm:$0xff] %vm158_vm5, %v156_v34 }
 0x22b   :  { %v162_v35 = vpop.permute.xlu1 %161 }
 0x22c   :  { %165 = vst.msk [vmem:[#allocation2] sm:$0xff] %vm164_vm6, %v162_v35 }
 0x22f   :  { %v168_v36 = vpop.permute.xlu1 %167 }
 0x230   :  { %171 = vst.msk [vmem:[#allocation2] sm:$0xff] %vm170_vm7, %v168_v36 }
 0x237   :  { %v172_v37 = vld [vmem:[#allocation2] sm:$0xff] }
 0x238   :  { %v173_v38 = vmul.f32 0.01, %v172_v37 }
 0x23a   :  { %v174_v39 = vmax.f32 %v172_v37, %v173_v38 }
 0x23c   :  { %366 = vmatprep.subr.mxu1 %v174_v39 }
 0x23d   :  { %367 = vmatpush3.msra.mxu1 %v174_v39 }
 0x23e   :  { %369 = vmatmul.mubr.msk.f32.vlgmr.msra.gmra.mrb[0].mxu1 %vm175_vm4, %v21_v40 }
 0x23f   :  { %371 = vmatprep.mubr.msk.f32.mxu1 %vm175_vm4, %v22_v41 }
 0x240   :  { %v284_v43 = vpop.permute.xlu1 %283 }
 0x242   :  { %372 = vmatmul.mubr.msk.f32.gmra.mrb[2].mxu1 %vm175_vm4, %v23_v42 }
 0x244   :  { %v289_v44 = vpop.permute.xlu1 %288 }
 0x248   :  { %v294_v49 = vpop.permute.xlu1 %293 }
 0x24c   :  { %v299_v62 = vpop.permute.xlu1 %298 }
 0x311   :  { %v370_v45 = vpop.f32.mrb[0].mxu1 }
 0x312   :  { %v274_v46 = vmul.f32 0.01, %v370_v45  ;;  %v254_v47 = vpop.f32.mrb[1].mxu1 }
 0x313   :  { %v273_v48 = vmul.f32 0.01, %v254_v47 }
 0x314   :  { %v278_v50 = vmax.f32 %v370_v45, %v274_v46 }
 0x315   :  { %v277_v51 = vmax.f32 %v254_v47, %v273_v48  ;;  %v373_v52 = vpop.f32.mrb[2].mxu1 }
 0x316   :  { %v302_v53 = vmul.f32 %v289_v44, %v278_v50  ;;  %v276_v54 = vmul.f32 0.01, %v373_v52  ;;  %v264_v55 = vpop.f32.mrb[3].mxu1 }
 0x317   :  { %v301_v56 = vmul.f32 %v284_v43, %v277_v51  ;;  %v275_v57 = vmul.f32 0.01, %v264_v55 }
 0x318   :  { %v307_v58 = vsel %vm305_vm8, %v302_v53, 0.0  ;;  %v280_v59 = vmax.f32 %v373_v52, %v276_v54 }
 0x319   :  { %v306_v60 = vsel %vm305_vm8, %v301_v56, 0.0  ;;  %v279_v61 = vmax.f32 %v264_v55, %v275_v57 }
 0x31a   :  { %v308_v63 = vadd.f32 %v307_v58, %v306_v60  ;;  %v304_v0 = vmul.f32 %v299_v62, %v280_v59 }
 0x31b   :  { %v303_v1 = vmul.f32 %v294_v49, %v279_v61 }
 0x31c   :  { %v311_v4 = vsel %vm305_vm8, %v304_v0, 0.0 }
 0x31d   :  { %v309_v2 = vsel %vm305_vm8, %v303_v1, 0.0 }
 0x31e   :  { %v310_v3 = vadd.f32 %v309_v2, %v308_v63 }
 0x320   :  { %v312_v5 = vadd.f32 %v311_v4, %v310_v3 }
 0x322   :  { %v313_v6 = vrot.slane %v312_v5, 4 }
 0x324   :  { %v314_v7 = vadd.f32 %v313_v6, %v312_v5 }
 0x326   :  { %v315_v8 = vrot.slane %v314_v7, 2 }
 0x328   :  { %v316_v9 = vadd.f32 %v315_v8, %v314_v7 }
 0x32a   :  { %v317_v10 = vrot.slane %v316_v9, 1 }
 0x32c   :  { %v318_v11 = vadd.f32 %v317_v10, %v316_v9 }
 0x32e   :  { %320 = vst.msk [vmem:[#allocation4] sm:$0x1] %vm319_vm9, %v318_v11 }
 0x32f   :  { %400 = shalt.err (!%p397_p4)
}
 0x330   :  { %s401_s27 = scalar_lea.hbm %s519_s3, 16 }
 0x331   :  { %p402_p5 = scmp.ne.s32.totalorder %s519_s3, %s401_s27  ;;  %p405_p6 = scmp.lt.u32.totalorder %s401_s27, %s519_s3 }
 0x333   :  { %p407_p7 = pnand %p405_p6, %p402_p5 }
 0x335   :  { %410 = shalt.err (!%p407_p7)
}
 0x336   :  { %330 = dma.vmem_to_hbm [thread:$0]  %s328_s22, 16, %s519_s3, [#allocation5]  }
 0x337   :  { %411 = dma.done.wait [#allocation5], 16  }
 0x338   :  { %412 = vsyncadd [#allocation5], 4294967280 }
 0x339   :  { %334 = vsyncpa [#allocation5], 1 }

</bundles_post_ra>
